<compile_context>
chip_gen: v5e
topology: v5e:2x2
jax: 0.10.0
libtpu: 0.0.40
codegen_flags: <defaults>
</compile_context>

<pallas_src>
import functools

import jax
import jax.numpy as jnp
from jax.experimental import pallas as pl
from jax.experimental.pallas import tpu as pltpu


def _random_nn_kernel(x_ref, w1_ref, b1_ref, w2_ref, b2_ref, wo_ref, bo_ref,
                      out_ref, *, c0, c1, min_variance):
    # x tile: (D, TILE_B) bf16, already lane-dense.
    x = x_ref[...]

    # hidden1 + ReLU: (H, D) @ (D, TILE_B) -> (H, TILE_B), f32 accumulation.
    h1 = jnp.dot(w1_ref[...], x, preferred_element_type=jnp.float32)
    h1 = jnp.maximum(h1 + b1_ref[...], 0.0)

    # hidden2 + ReLU: (H, H) @ (H, TILE_B) -> (H, TILE_B)
    h2 = jnp.dot(w2_ref[...], h1.astype(jnp.bfloat16),
                 preferred_element_type=jnp.float32)
    h2 = jnp.maximum(h2 + b2_ref[...], 0.0)

    # dropout (eval mode) == identity

    # output head: (2, H) @ (H, TILE_B) -> (2, TILE_B)
    logits = jnp.dot(wo_ref[...], h2.astype(jnp.bfloat16),
                     preferred_element_type=jnp.float32)
    logits = logits + bo_ref[...]
    s = jax.nn.sigmoid(logits)                      # (2, TILE_B)

    # Scalar constants only (no captured arrays); two lane-dense row stores.
    out_ref[0:1, :] = s[0:1, :] * c0                # mean row
    out_ref[1:2, :] = s[1:2, :] * c1 + min_variance  # variance row


def _round_up(n, m):
    return ((n + m - 1) // m) * m


def prepare_params(params):
    """One-time prep (outside the hot path): feature-major bf16 weights,
    column-shaped (N, 1) f32 biases."""
    H = params["w1"].shape[1]
    return dict(
        w1t=params["w1"].T.astype(jnp.bfloat16),            # (H, D)
        w2t=params["w2"].T.astype(jnp.bfloat16),            # (H, H)
        wot=params["wo"].T.astype(jnp.bfloat16),            # (2, H)
        b1=params["b1"].reshape(H, 1).astype(jnp.float32),  # (H, 1)
        b2=params["b2"].reshape(H, 1).astype(jnp.float32),  # (H, 1)
        bo=params["bo"].reshape(2, 1).astype(jnp.float32),  # (2, 1)
    )


def _default_tile_b(B):
    # Cap tile rows at 8192 (~4 MiB lane-dense footprint); force >= 2 steps
    # once B > 128 so the megacore "parallel" axis has work for both cores.
    n_steps = max(1, pl.cdiv(B, 8192))
    if B > 128:
        n_steps = max(n_steps, 2)
    return max(128, _round_up(pl.cdiv(B, n_steps), 128))


def random_nn_forward(x, kparams, *, c=(1.0, 0.1), min_variance=1e-5, tile_b=None):
    """x: (B, D) float32. kparams: output of prepare_params(). Returns (mean, var)."""
    B, D = x.shape
    H = kparams["w1t"].shape[0]

    if tile_b is None:
        tile_b = _default_tile_b(B)
    else:
        tile_b = max(128, _round_up(int(tile_b), 128))
    B_pad = _round_up(B, tile_b)

    # Feature-major bf16 staging: pad + transpose + cast fuse into a single
    # XLA copy.  (In production the producer would emit (D, B) bf16 directly.)
    xt = jnp.pad(x, ((0, B_pad - B), (0, 0))).T.astype(jnp.bfloat16)  # (D, B_pad)

    grid = (B_pad // tile_b,)

    kernel = functools.partial(
        _random_nn_kernel, c0=float(c[0]), c1=float(c[1]),
        min_variance=float(min_variance))

    def resident(shape):
        # Same block every grid step -> stays resident in VMEM.
        return pl.BlockSpec(shape, lambda i: (0, 0))

    w_bytes = (D * H + H * H + H * 2) * 2 + (H + H + 2) * 4
    cost = pl.CostEstimate(
        flops=2 * B_pad * (D * H + H * H + H * 2),
        transcendentals=2 * B_pad,
        bytes_accessed=B_pad * D * 2 + B_pad * 2 * 4 + w_bytes)

    out = pl.pallas_call(
        kernel,
        out_shape=jax.ShapeDtypeStruct((2, B_pad), jnp.float32),
        grid=grid,
        in_specs=[
            pl.BlockSpec((D, tile_b), lambda i: (0, i)),   # x: tiled + pipelined
            resident((H, D)), resident((H, 1)),            # W1^T, b1
            resident((H, H)), resident((H, 1)),            # W2^T, b2
            resident((2, H)), resident((2, 1)),            # Wo^T, bo
        ],
        out_specs=pl.BlockSpec((2, tile_b), lambda i: (0, i)),   # lane-dense output
        compiler_params=pltpu.CompilerParams(
            dimension_semantics=("parallel",)),            # megacore on v7x
        cost_estimate=cost,
    )(xt, kparams["w1t"], kparams["b1"], kparams["w2t"], kparams["b2"],
      kparams["wot"], kparams["bo"])

    return out[0, :B], out[1, :B]   # match torch: (B,), (B,)


def init_params(key, n_inputs, n_hidden):
    """Deterministic init mimicking torch.nn.Linear default (U[-1/sqrt(fan_in), +]).

    Weights stored (in_features, out_features); prepare_params transposes.
    """
    ks = jax.random.split(key, 6)

    def lin(kw, kb, fan_in, fan_out):
        bound = 1.0 / jnp.sqrt(fan_in)
        w = jax.random.uniform(kw, (fan_in, fan_out), jnp.float32, -bound, bound)
        b = jax.random.uniform(kb, (fan_out,), jnp.float32, -bound, bound)
        return w, b

    w1, b1 = lin(ks[0], ks[1], n_inputs, n_hidden)
    w2, b2 = lin(ks[2], ks[3], n_hidden, n_hidden)
    wo, bo = lin(ks[4], ks[5], n_hidden, 2)
    return dict(w1=w1, b1=b1, w2=w2, b2=b2, wo=wo, bo=bo)


def reference_forward(x, params, *, c=(1.0, 0.1), min_variance=1e-5):
    h1 = jnp.maximum(x @ params["w1"] + params["b1"], 0.0)
    h2 = jnp.maximum(h1 @ params["w2"] + params["b2"], 0.0)
    out = h2 @ params["wo"] + params["bo"]
    mean = jax.nn.sigmoid(out[:, 0]) * c[0]
    var = jax.nn.sigmoid(out[:, 1]) * c[1] + min_variance
    return mean, var


if __name__ == "__main__":
    D, H = 16, 32
    key = jax.random.PRNGKey(0)
    kx, kp = jax.random.split(key)

    params = init_params(kp, D, H)        # f32 reference params
    kparams = prepare_params(params)      # kernel params (bf16 W^T, column biases)

    # --- small demo shape (single grid step) ---
    B = 8
    x = jax.random.normal(kx, (B, D), jnp.float32)
    mean, var = random_nn_forward(x, kparams)
    jax.block_until_ready((mean, var))

    mean_ref, var_ref = reference_forward(x, params)
    assert mean.shape == (B,) and var.shape == (B,)
    assert jnp.allclose(mean, mean_ref, atol=5e-2)   # bf16 matmul tolerance
    assert jnp.allclose(var, var_ref, atol=5e-3)

    # --- multi-step grid + ragged batch (padding) path ---
    B2 = 300
    x2 = jax.random.normal(jax.random.PRNGKey(1), (B2, D), jnp.float32)
    mean2, var2 = random_nn_forward(x2, kparams, tile_b=128)
    jax.block_until_ready((mean2, var2))

    mean2_ref, var2_ref = reference_forward(x2, params)
    assert mean2.shape == (B2,) and var2.shape == (B2,)
    assert jnp.allclose(mean2, mean2_ref, atol=5e-2)
    assert jnp.allclose(var2, var2_ref, atol=5e-3)

    print("KERNEL_OK")
</pallas_src>

<mosaic_0001>
module attributes {stable_mosaic.version = 11 : i64} {
  func.func @_random_nn_kernel(%arg0: i32, %arg1: memref<16x128xbf16, #tpu.memory_space<vmem>>, %arg2: memref<32x16xbf16, #tpu.memory_space<vmem>>, %arg3: memref<32x1xf32, #tpu.memory_space<vmem>>, %arg4: memref<32x32xbf16, #tpu.memory_space<vmem>>, %arg5: memref<32x1xf32, #tpu.memory_space<vmem>>, %arg6: memref<2x32xbf16, #tpu.memory_space<vmem>>, %arg7: memref<2x1xf32, #tpu.memory_space<vmem>>, %arg8: memref<2x128xf32, #tpu.memory_space<vmem>>) attributes {dimension_semantics = [#tpu.dimension_semantics<parallel>], iteration_bounds = array<i64: 1>, scalar_prefetch = 0 : i64, scratch_operands = 0 : i64, tpu.core_type = #tpu.core_type<tc>, window_params = [{transform_indices = @transform_0, window_bounds = array<i64: 16, 128>}, {pipeline_mode = #tpu.pipeline_mode<synchronous>, transform_indices = @transform_1, window_bounds = array<i64: 32, 16>}, {pipeline_mode = #tpu.pipeline_mode<synchronous>, transform_indices = @transform_2, window_bounds = array<i64: 32, 1>}, {pipeline_mode = #tpu.pipeline_mode<synchronous>, transform_indices = @transform_3, window_bounds = array<i64: 32, 32>}, {pipeline_mode = #tpu.pipeline_mode<synchronous>, transform_indices = @transform_4, window_bounds = array<i64: 32, 1>}, {pipeline_mode = #tpu.pipeline_mode<synchronous>, transform_indices = @transform_5, window_bounds = array<i64: 2, 32>}, {pipeline_mode = #tpu.pipeline_mode<synchronous>, transform_indices = @transform_6, window_bounds = array<i64: 2, 1>}, {transform_indices = @transform_7, window_bounds = array<i64: 2, 128>}]} {
    %c0 = arith.constant 0 : index
    %c0_0 = arith.constant 0 : index
    %0 = vector.load %arg1[%c0, %c0_0] : memref<16x128xbf16, #tpu.memory_space<vmem>>, vector<16x128xbf16>
    %c0_1 = arith.constant 0 : index
    %c0_2 = arith.constant 0 : index
    %1 = vector.load %arg2[%c0_1, %c0_2] : memref<32x16xbf16, #tpu.memory_space<vmem>>, vector<32x16xbf16>
    %cst = arith.constant dense<0.000000e+00> : vector<32x128xf32>
    %2 = tpu.matmul %1, %0, %cst {dimension_numbers = #tpu.dot_dimension_numbers<[1], [0], [0], [1], [0, 0, 1, 1], [], []>} : vector<32x16xbf16>, vector<16x128xbf16>, vector<32x128xf32> -> vector<32x128xf32>
    %c0_3 = arith.constant 0 : index
    %c0_4 = arith.constant 0 : index
    %3 = vector.load %arg3[%c0_3, %c0_4] : memref<32x1xf32, #tpu.memory_space<vmem>>, vector<32x1xf32>
    %4 = vector.broadcast %3 : vector<32x1xf32> to vector<32x128xf32>
    %5 = arith.addf %2, %4 : vector<32x128xf32>
    %cst_5 = arith.constant 0.000000e+00 : f32
    %6 = vector.broadcast %cst_5 : f32 to vector<32x128xf32>
    %7 = arith.maximumf %5, %6 : vector<32x128xf32>
    %c0_6 = arith.constant 0 : index
    %c0_7 = arith.constant 0 : index
    %8 = vector.load %arg4[%c0_6, %c0_7] : memref<32x32xbf16, #tpu.memory_space<vmem>>, vector<32x32xbf16>
    %9 = arith.truncf %7 : vector<32x128xf32> to vector<32x128xbf16>
    %cst_8 = arith.constant dense<0.000000e+00> : vector<32x128xf32>
    %10 = tpu.matmul %8, %9, %cst_8 {dimension_numbers = #tpu.dot_dimension_numbers<[1], [0], [0], [1], [0, 0, 1, 1], [], []>} : vector<32x32xbf16>, vector<32x128xbf16>, vector<32x128xf32> -> vector<32x128xf32>
    %c0_9 = arith.constant 0 : index
    %c0_10 = arith.constant 0 : index
    %11 = vector.load %arg5[%c0_9, %c0_10] : memref<32x1xf32, #tpu.memory_space<vmem>>, vector<32x1xf32>
    %12 = vector.broadcast %11 : vector<32x1xf32> to vector<32x128xf32>
    %13 = arith.addf %10, %12 : vector<32x128xf32>
    %cst_11 = arith.constant 0.000000e+00 : f32
    %14 = vector.broadcast %cst_11 : f32 to vector<32x128xf32>
    %15 = arith.maximumf %13, %14 : vector<32x128xf32>
    %c0_12 = arith.constant 0 : index
    %c0_13 = arith.constant 0 : index
    %16 = vector.load %arg6[%c0_12, %c0_13] : memref<2x32xbf16, #tpu.memory_space<vmem>>, vector<2x32xbf16>
    %17 = arith.truncf %15 : vector<32x128xf32> to vector<32x128xbf16>
    %cst_14 = arith.constant dense<0.000000e+00> : vector<2x128xf32>
    %18 = tpu.matmul %16, %17, %cst_14 {dimension_numbers = #tpu.dot_dimension_numbers<[1], [0], [0], [1], [0, 0, 1, 1], [], []>} : vector<2x32xbf16>, vector<32x128xbf16>, vector<2x128xf32> -> vector<2x128xf32>
    %c0_15 = arith.constant 0 : index
    %c0_16 = arith.constant 0 : index
    %19 = vector.load %arg7[%c0_15, %c0_16] : memref<2x1xf32, #tpu.memory_space<vmem>>, vector<2x1xf32>
    %20 = vector.broadcast %19 : vector<2x1xf32> to vector<2x128xf32>
    %21 = arith.addf %18, %20 : vector<2x128xf32>
    %22 = arith.negf %21 : vector<2x128xf32>
    %23 = math.exp %22 : vector<2x128xf32>
    %cst_17 = arith.constant 1.000000e+00 : f32
    %24 = vector.broadcast %cst_17 : f32 to vector<2x128xf32>
    %25 = arith.addf %24, %23 : vector<2x128xf32>
    %26 = arith.divf %24, %25 : vector<2x128xf32>
    %27 = vector.extract_strided_slice %26 {offsets = [0, 0], sizes = [1, 128], strides = [1, 1]} : vector<2x128xf32> to vector<1x128xf32>
    %cst_18 = arith.constant 1.000000e+00 : f32
    %28 = vector.broadcast %cst_18 : f32 to vector<1x128xf32>
    %29 = arith.mulf %27, %28 : vector<1x128xf32>
    %c0_19 = arith.constant 0 : index
    %c0_20 = arith.constant 0 : index
    %30 = vector.load %arg8[%c0_19, %c0_20] : memref<2x128xf32, #tpu.memory_space<vmem>>, vector<1x128xf32>
    tpu.vector_store %arg8[%c0_19, %c0_20], %29 {strides = array<i32>} : memref<2x128xf32, #tpu.memory_space<vmem>>, vector<1x128xf32>,
    %31 = vector.extract_strided_slice %26 {offsets = [1, 0], sizes = [1, 128], strides = [1, 1]} : vector<2x128xf32> to vector<1x128xf32>
    %cst_21 = arith.constant 1.000000e-01 : f32
    %32 = vector.broadcast %cst_21 : f32 to vector<1x128xf32>
    %33 = arith.mulf %31, %32 : vector<1x128xf32>
    %cst_22 = arith.constant 9.99999974E-6 : f32
    %34 = vector.broadcast %cst_22 : f32 to vector<1x128xf32>
    %35 = arith.addf %33, %34 : vector<1x128xf32>
    %c1 = arith.constant 1 : index
    %c0_23 = arith.constant 0 : index
    %36 = vector.load %arg8[%c1, %c0_23] : memref<2x128xf32, #tpu.memory_space<vmem>>, vector<1x128xf32>
    tpu.vector_store %arg8[%c1, %c0_23], %35 {strides = array<i32>} : memref<2x128xf32, #tpu.memory_space<vmem>>, vector<1x128xf32>,
    return
  }
  func.func @transform_0(%arg0: i32) -> (i32, i32) {
    %c0_i32 = arith.constant 0 : i32
    %c0_i32_0 = arith.constant 0 : i32
    return %c0_i32, %arg0 : i32, i32
  }
  func.func @transform_1(%arg0: i32) -> (i32, i32) {
    %c0_i32 = arith.constant 0 : i32
    %c0_i32_0 = arith.constant 0 : i32
    %c0_i32_1 = arith.constant 0 : i32
    return %c0_i32, %c0_i32_0 : i32, i32
  }
  func.func @transform_2(%arg0: i32) -> (i32, i32) {
    %c0_i32 = arith.constant 0 : i32
    %c0_i32_0 = arith.constant 0 : i32
    %c0_i32_1 = arith.constant 0 : i32
    return %c0_i32, %c0_i32_0 : i32, i32
  }
  func.func @transform_3(%arg0: i32) -> (i32, i32) {
    %c0_i32 = arith.constant 0 : i32
    %c0_i32_0 = arith.constant 0 : i32
    %c0_i32_1 = arith.constant 0 : i32
    return %c0_i32, %c0_i32_0 : i32, i32
  }
  func.func @transform_4(%arg0: i32) -> (i32, i32) {
    %c0_i32 = arith.constant 0 : i32
    %c0_i32_0 = arith.constant 0 : i32
    %c0_i32_1 = arith.constant 0 : i32
    return %c0_i32, %c0_i32_0 : i32, i32
  }
  func.func @transform_5(%arg0: i32) -> (i32, i32) {
    %c0_i32 = arith.constant 0 : i32
    %c0_i32_0 = arith.constant 0 : i32
    %c0_i32_1 = arith.constant 0 : i32
    return %c0_i32, %c0_i32_0 : i32, i32
  }
  func.func @transform_6(%arg0: i32) -> (i32, i32) {
    %c0_i32 = arith.constant 0 : i32
    %c0_i32_0 = arith.constant 0 : i32
    %c0_i32_1 = arith.constant 0 : i32
    return %c0_i32, %c0_i32_0 : i32, i32
  }
  func.func @transform_7(%arg0: i32) -> (i32, i32) {
    %c0_i32 = arith.constant 0 : i32
    %c0_i32_0 = arith.constant 0 : i32
    return %c0_i32, %arg0 : i32, i32
  }
}

</mosaic_0001>

<bundles_post_ra>
// kernel: tpu_custom_call.1
= control target key start
LH: loop header
LB: loop body
LE: loop exit
PB: predicated region body
PF: predicated region fallthrough
CT: control target
= control target key end

     0   :  { %v306_v3 = vmov 0   ;;  %vm74_vm0 = vcmask 130048   ;;  %s399_s0 = inlined_call_operand.vmem [shape: bf16[16,128], index: 0, kind: input, shape index: {}]   ;;  %s400_s1 = inlined_call_operand.vmem [shape: bf16[32,16], index: 1, kind: input, shape index: {}]   ;;  %s401_s2 = inlined_call_operand.vmem [shape: f32[32,1], index: 2, kind: input, shape index: {}]   ;;  %s402_s3 = inlined_call_operand.vmem [shape: bf16[32,32], index: 3, kind: input, shape index: {}]   ;;  %s403_s4 = inlined_call_operand.vmem [shape: f32[32,1], index: 4, kind: input, shape index: {}]   ;;  %s404_s5 = inlined_call_operand.vmem [shape: bf16[2,32], index: 5, kind: input, shape index: {}]   ;;  %s405_s6 = inlined_call_operand.vmem [shape: f32[2,1], index: 6, kind: input, shape index: {}]   ;;  %s406_s7 = inlined_call_operand.hbm [shape: f32[2,128], index: 7, kind: output, shape index: {}]  }
   0x1   :  { %v264_v0 = vld [vmem:[%s399_s0] sm:$0xff]  ;;  %v36_v1 = vld [vmem:[%s401_s2 + $0x10] sm:$0xff]  ;;  %274 = vset.pattern.permute.xlu1 %v306_v3  ;;  %273 = vset.pattern.permute.xlu0 %v306_v3 }
   0x2   :  { %v265_v2 = vld [vmem:[%s400_s1] sm:$0xff]  ;;  %88 = vmatpush.bf16.msra.mxu0 %v264_v0  ;;  %50 = vperm.xlu0 %273, %v36_v1  }
   0x3   :  { %v34_v4 = vld [vmem:[%s401_s2] sm:$0xff]  ;;  %275 = vset.pattern.permute.xlu2 %v306_v3 }
   0x4   :  { %40 = vperm.xlu1 %274, %v34_v4  }
   0x5   :  { %12 = vsyncpa [#allocation3], 0  ;;  %250 = vmatmul.msk.bf16.vlgmr.msra.gmra.mxu0 %vm74_vm0, %v265_v2  ;;  %v37_v5 = vld [vmem:[%s401_s2 + $0x18] sm:$0xff]  ;;  %v35_v6 = vld [vmem:[%s401_s2 + $0x8] sm:$0xff]  ;;  %vm144_vm1 = vcmask 261120   ;;  %s229_s28 = sshll.u32 %s406_s7, 4  ;;  %s230_s28 = int_to_ptr.hbm [resolvable:$true] %s229_s28 }
   0x6   :  { %v110_v7 = vld [vmem:[%s403_s4] sm:$0xff]  ;;  %v111_v8 = vld [vmem:[%s403_s4 + $0x8] sm:$0xff]  ;;  %v112_v11 = vld [vmem:[%s403_s4 + $0x10] sm:$0xff] }
   0x7   :  { %v266_v9 = vld [vmem:[%s400_s1 + $0x8] sm:$0xff]  ;;  %126 = vperm.xlu2 %275, %v112_v11   ;;  %v113_v14 = vld [vmem:[%s403_s4 + $0x18] sm:$0xff]  ;;  %v177_v17 = vld [vmem:[%s405_s6] sm:$0x3] }
   0x8   :  { %v267_v31 = vld [vmem:[%s402_s3] sm:$0xff]  ;;  %v268_v32 = vld [vmem:[%s402_s3 + $0x8] sm:$0xff] }
   0x9   :  { %v174_v51 = vld [vmem:[%s404_s5] sm:$0x1]  ;;  %s307_s5 = smov [#allocation2]  }
   0xa   :  { %55 = vperm.xlu0 %273, %v37_v5   ;;  %s227_s25 = sshll.u32 %s307_s5, 4  ;;  %s228_s25 = int_to_ptr.vmem [resolvable:$true] %s227_s25 }
   0xc   :  { %45 = vperm.xlu1 %274, %v35_v6  }
   0xf   :  { %131 = vperm.xlu2 %275, %v113_v14  }
  0x12   :  { %116 = vperm.xlu0 %273, %v110_v7  }
  0x14   :  { %121 = vperm.xlu1 %274, %v111_v8  }
  0x15   :  { %251 = vmatmul.msk.bf16.gmra.mxu0 %vm74_vm0, %v266_v9 }
  0x17   :  { %180 = vperm.xlu2 %275, %v177_v17  }
  0x61   :  { %v127_v34 = vpop.permute.xlu2 %126 }
  0x69   :  { %v132_v39 = vpop.permute.xlu2 %131 }
  0x71   :  { %v181_v52 = vpop.permute.xlu2 %180 }
  0x74   :  { %v51_v15 = vpop.permute.xlu0 %50 }
  0x76   :  { %v41_v13 = vpop.permute.xlu1 %40 }
  0x7c   :  { %v56_v20 = vpop.permute.xlu0 %55 }
  0x7e   :  { %v46_v18 = vpop.permute.xlu1 %45 }
  0x82   :  { %v90_v10 = vpop.f32.mrf.mxu0 }
  0x83   :  { %v91_v24 = vadd.f32 %v90_v10, %v41_v13 }
  0x84   :  { %v117_v43 = vpop.permute.xlu0 %116 }
  0x85   :  { %v100_v29 = vmax.f32 %v91_v24, 0.0 }
  0x86   :  { %v122_v37 = vpop.permute.xlu1 %121 }
  0x8a   :  { %v92_v12 = vpop.f32.mrf.mxu0 }
  0x8b   :  { %v93_v22 = vadd.f32 %v92_v12, %v46_v18 }
  0x8d   :  { %v101_v27 = vmax.f32 %v93_v22, 0.0 }
  0x8f   :  { %v108_v30 = vpack.c.bf16 %v101_v27, %v100_v29 }
  0x92   :  { %v95_v16 = vpop.f32.mrf.mxu0 }
  0x93   :  { %v96_v19 = vadd.f32 %v95_v16, %v51_v15 }
  0x95   :  { %v102_v25 = vmax.f32 %v96_v19, 0.0 }
  0x9a   :  { %v97_v21 = vpop.f32.mrf.mxu0 }
  0x9b   :  { %v98_v23 = vadd.f32 %v97_v21, %v56_v20 }
  0x9d   :  { %v103_v26 = vmax.f32 %v98_v23, 0.0 }
  0x9f   :  { %v109_v28 = vpack.c.bf16 %v103_v26, %v102_v25 }
  0xa1   :  { %157 = vmatpush.bf16.msra.mxu1 %v109_v28  ;;  %269 = vmatpush.bf16.msra.mxu3 %v109_v28 }
  0xa5   :  { %158 = vmatpush.bf16.msra.mxu1 %v108_v30  ;;  %270 = vmatpush.bf16.msra.mxu3 %v108_v30 }
  0xa8   :  { %260 = vmatmul.msk.bf16.vlgmr.msra.gmra.mxu1 %vm144_vm1, %v267_v31  ;;  %261 = vmatmul.msk.bf16.vlgmr.msra.gmra.mxu3 %vm144_vm1, %v268_v32 }
 0x125   :  { %v160_v33 = vpop.f32.mrf.mxu1 }
 0x126   :  { %v161_v44 = vadd.f32 %v160_v33, %v117_v43 }
 0x128   :  { %v170_v49 = vmax.f32 %v161_v44, 0.0 }
 0x12b   :  { %v165_v35 = vpop.f32.mrf.mxu3 }
 0x12c   :  { %v166_v38 = vadd.f32 %v165_v35, %v127_v34 }
 0x12d   :  { %v162_v36 = vpop.f32.mrf.mxu1 }
 0x12e   :  { %v163_v41 = vadd.f32 %v162_v36, %v122_v37  ;;  %v172_v45 = vmax.f32 %v166_v38, 0.0 }
 0x130   :  { %v171_v47 = vmax.f32 %v163_v41, 0.0 }
 0x132   :  { %v175_v50 = vpack.c.bf16 %v171_v47, %v170_v49 }
 0x133   :  { %v167_v40 = vpop.f32.mrf.mxu3 }
 0x134   :  { %v168_v42 = vadd.f32 %v167_v40, %v132_v39 }
 0x136   :  { %v173_v46 = vmax.f32 %v168_v42, 0.0 }
 0x138   :  { %v176_v48 = vpack.c.bf16 %v173_v46, %v172_v45 }
 0x13a   :  { %192 = vmatpush.bf16.msra.mxu2 %v176_v48 }
 0x13e   :  { %193 = vmatpush.bf16.msra.mxu2 %v175_v50 }
 0x141   :  { %262 = vmatmul.msk.bf16.vlgmr.msra.gmra.mxu2 %vm144_vm1, %v174_v51 }
 0x1c4   :  { %v195_v53 = vpop.f32.mrf.mxu2 }
 0x1c5   :  { %v196_v54 = vadd.f32 %v195_v53, %v181_v52 }
 0x1c7   :  { %v263_v55 = vmul.f32 -1.442695, %v196_v54 }
 0x1c9   :  { %276 = vpow2.f32 %v263_v55 }
 0x1cc   :  { %v197_v56 = vpop.f32.mrf.mxu2 }
 0x1cf   :  { %v277_v57 = vpop.eup %276 }
 0x1d0   :  { %v202_v58 = vadd.f32 1.0, %v277_v57 }
 0x1d2   :  { %278 = vrcp.f32 %v202_v58  ;;  %v214_v62 = vand.u32 2147483648, %v202_v58  ;;  %v212_v0 = vand.u32 2147483647, %v202_v58  ;;  %vm208_vm3 = vweird.f32 %v202_v58 }
 0x1d4   :  { %v215_v2 = vor.u32 1.1754944e-38, %v214_v62  ;;  %vm213_vm5 = vcmp.eq.f32.partialorder %v212_v0, 8.507059e+37 }
 0x1d8   :  { %v279_v59 = vpop.eup %278 }
 0x1d9   :  { %v204_v60 = vmul.f32 %v279_v59, %v202_v58  ;;  %vm209_vm2 = vweird.f32 %v279_v59 }
 0x1da   :  { %vm210_vm4 = vmor %vm208_vm3, %vm209_vm2 }
 0x1db   :  { %v205_v61 = vsub.f32 1.0, %v204_v60 }
 0x1dd   :  { %v206_v63 = vmul.f32 %v279_v59, %v205_v61 }
 0x1df   :  { %v207_v1 = vadd.f32 %v279_v59, %v206_v63 }
 0x1e1   :  { %v211_v3 = vsel %vm210_vm4, %v279_v59, %v207_v1 }
 0x1e2   :  { %v216_v4 = vsel %vm213_vm5, %v215_v2, %v211_v3 }
 0x1e3   :  { %218 = vst [vmem:[#allocation2] sm:$0x1] %v216_v4  ;;  %v219_v5 = vmul.f32 0.1, %v216_v4 }
 0x1e5   :  { %v220_v6 = vadd.f32 1e-05, %v219_v5 }
 0x1e7   :  { %221 = vst [vmem:[#allocation2] sm:$0x2] %v220_v6 }
 0x1e8   :  { %232 = dma.vmem_to_hbm [thread:$0]  %s228_s25, 32, %s230_s28, [#allocation3]  }
 0x1e9   :  { %304 = dma.done.wait [#allocation3], 32  }
 0x1ea   :  { %305 = vsyncadd [#allocation3], 4294967264 }
 0x1eb   :  { %237 = vsyncpa [#allocation3], 1 }

</bundles_post_ra>
